<compile_context>
chip_gen: v7x
topology: tpu7x:2x2x1
jax: 0.10.0
libtpu: 0.0.40
codegen_flags: <defaults>
</compile_context>

<pallas_src>
import jax
import jax.numpy as jnp
from jax.experimental import pallas as pl
from jax.experimental.pallas import tpu as pltpu


# Flat SMEM parameter layout (all f32 scalars):
#   [ 0:15)  W1 row-major (3, 5):  W1[k, j] at k*5 + j
#   [15:20)  b1 (5,)
#   [20:25)  w2_diff = W2[:, 1] - W2[:, 0]   (5,)
#   [25:26)  b2_diff = b2[1] - b2[0]         (1,)
_W1_OFF, _B1_OFF, _W2D_OFF, _B2D_OFF, _N_PARAMS = 0, 15, 20, 25, 26
_IN, _HID, _OUT = 3, 5, 2


def mlp_softmax_kernel(params_ref, x_ref, o_ref):
    """params_ref: (26,) f32 SMEM; x_ref: (3, TB) f32 VMEM (batch on lanes);
    o_ref: (2, TB) f32 VMEM."""
    x = x_ref[...]                                       # (3, TB)
    xs = tuple(x[k:k + 1, :] for k in range(_IN))        # each (1, TB)

    # hidden = ReLU(x @ W1 + b1): unrolled VPU scalar*vector FMAs per feature.
    hs = []
    for j in range(_HID):
        acc = xs[0] * params_ref[_W1_OFF + 0 * _HID + j]
        for k in range(1, _IN):
            acc = acc + xs[k] * params_ref[_W1_OFF + k * _HID + j]
        acc = acc + params_ref[_B1_OFF + j]               # bias added once/tile
        hs.append(jnp.maximum(acc, 0.0))

    # 2-class softmax only depends on d = l1 - l0:
    #   softmax([l0, l1]) = [1/(1+exp(d)), 1 - 1/(1+exp(d))]
    d = hs[0] * params_ref[_W2D_OFF + 0]
    for i in range(1, _HID):
        d = d + hs[i] * params_ref[_W2D_OFF + i]
    d = d + params_ref[_B2D_OFF]

    p0 = pl.reciprocal(1.0 + jnp.exp(d), approx=True)     # EUP exp + vrcp
    o_ref[0:1, :] = p0
    o_ref[1:2, :] = 1.0 - p0


def _round_up(a, m):
    return ((a + m - 1) // m) * m


def network_forward(x, w1, b1, w2, b2, *, tb=1024):
    """x: (B, 3) f32; w1: (3, 5); b1: (5,); w2: (5, 2); b2: (2,). Returns (B, 2)."""
    # TODO(synk): for tiny batches (B ~ 8) a plain fused XLA op beats the
    # pallas_call launch overhead; the kernel path is meant for large B.
    B = x.shape[0]

    # Pack all parameters into one flat SMEM-resident vector (single tiny DMA).
    params = jnp.concatenate([
        w1.reshape(-1).astype(jnp.float32),
        b1.reshape(-1).astype(jnp.float32),
        (w2[:, 1] - w2[:, 0]).reshape(-1).astype(jnp.float32),
        (b2.reshape(-1)[1:2] - b2.reshape(-1)[0:1]).astype(jnp.float32),
    ])
    assert params.shape == (_N_PARAMS,)

    # Batch-on-lanes layout, lane dim padded to a multiple of the batch tile.
    tb = _round_up(max(int(tb), 128), 128)
    tb_eff = min(tb, _round_up(B, 128))
    b_pad = _round_up(B, tb_eff)
    xt = x.T.astype(jnp.float32)                          # (3, B)
    if b_pad != B:
        xt = jnp.pad(xt, ((0, 0), (0, b_pad - B)))

    grid = (b_pad // tb_eff,)
    out = pl.pallas_call(
        mlp_softmax_kernel,
        out_shape=jax.ShapeDtypeStruct((_OUT, b_pad), jnp.float32),
        grid=grid,
        in_specs=[
            # Whole flat param vector, resident in SMEM across all grid steps.
            pl.BlockSpec(memory_space=pltpu.MemorySpace.SMEM),
            # x tile: (3, TB), batch on lanes, streamed/double-buffered.
            pl.BlockSpec((_IN, tb_eff), lambda i: (0, i),
                         memory_space=pltpu.MemorySpace.VMEM),
        ],
        out_specs=pl.BlockSpec((_OUT, tb_eff), lambda i: (0, i),
                               memory_space=pltpu.MemorySpace.VMEM),
        compiler_params=pltpu.CompilerParams(
            dimension_semantics=("parallel",)),           # megacore split on v7x
    )(params, xt)

    return out[:, :B].T                                    # back to (B, 2)


def init_params(key):
    """Deterministic init mirroring nn.Linear (stored transposed as (in, out))."""
    k1, k2, k3, k4 = jax.random.split(key, 4)
    lim1 = 1.0 / jnp.sqrt(jnp.float32(_IN))
    lim2 = 1.0 / jnp.sqrt(jnp.float32(_HID))
    w1 = jax.random.uniform(k1, (_IN, _HID), jnp.float32, -lim1, lim1)
    b1 = jax.random.uniform(k2, (_HID,), jnp.float32, -lim1, lim1)
    w2 = jax.random.uniform(k3, (_HID, _OUT), jnp.float32, -lim2, lim2)
    b2 = jax.random.uniform(k4, (_OUT,), jnp.float32, -lim2, lim2)
    return w1, b1, w2, b2


if __name__ == "__main__":
    key = jax.random.PRNGKey(0)
    k_params, k_x = jax.random.split(key)
    w1, b1, w2, b2 = init_params(k_params)

    B = 8  # small demo batch (padded to one 128-wide lane tile inside the wrapper)
    x = jax.random.normal(k_x, (B, 3), jnp.float32)

    out = jax.block_until_ready(network_forward(x, w1, b1, w2, b2))

    # Reference in plain JAX (exact softmax).
    h_ref = jnp.maximum(x @ w1 + b1, 0.0)
    ref = jax.nn.softmax(h_ref @ w2 + b2, axis=1)

    assert out.shape == (B, 2)
    # approx reciprocal on the EUP -> allow a slightly looser tolerance.
    assert jnp.allclose(out, ref, atol=2e-3), "mismatch vs reference"
    assert jnp.allclose(jnp.sum(out, axis=1), 1.0, atol=1e-5)

    print("KERNEL_OK")
</pallas_src>

<mosaic_0001>
module attributes {stable_mosaic.version = 11 : i64} {
  func.func @mlp_softmax_kernel(%arg0: i32, %arg1: memref<26xf32, #tpu.memory_space<smem>>, %arg2: memref<3x128xf32, #tpu.memory_space<vmem>>, %arg3: memref<2x128xf32, #tpu.memory_space<vmem>>) attributes {dimension_semantics = [#tpu.dimension_semantics<parallel>], iteration_bounds = array<i64: 1>, scalar_prefetch = 0 : i64, scratch_operands = 0 : i64, tpu.core_type = #tpu.core_type<tc>, window_params = [{transform_indices = @transform_0, window_bounds = array<i64: 26>}, {transform_indices = @transform_1, window_bounds = array<i64: 3, 128>}, {transform_indices = @transform_2, window_bounds = array<i64: 2, 128>}]} {
    %c0 = arith.constant 0 : index
    %c0_0 = arith.constant 0 : index
    %0 = vector.load %arg2[%c0, %c0_0] : memref<3x128xf32, #tpu.memory_space<vmem>>, vector<3x128xf32>
    %1 = vector.extract_strided_slice %0 {offsets = [0, 0], sizes = [1, 128], strides = [1, 1]} : vector<3x128xf32> to vector<1x128xf32>
    %2 = vector.extract_strided_slice %0 {offsets = [1, 0], sizes = [1, 128], strides = [1, 1]} : vector<3x128xf32> to vector<1x128xf32>
    %3 = vector.extract_strided_slice %0 {offsets = [2, 0], sizes = [1, 128], strides = [1, 1]} : vector<3x128xf32> to vector<1x128xf32>
    %c0_1 = arith.constant 0 : index
    %4 = memref.load %arg1[%c0_1] : memref<26xf32, #tpu.memory_space<smem>>
    %5 = vector.broadcast %4 : f32 to vector<1x128xf32>
    %6 = arith.mulf %1, %5 : vector<1x128xf32>
    %c5 = arith.constant 5 : index
    %7 = memref.load %arg1[%c5] : memref<26xf32, #tpu.memory_space<smem>>
    %8 = vector.broadcast %7 : f32 to vector<1x128xf32>
    %9 = arith.mulf %2, %8 : vector<1x128xf32>
    %10 = arith.addf %6, %9 : vector<1x128xf32>
    %c10 = arith.constant 10 : index
    %11 = memref.load %arg1[%c10] : memref<26xf32, #tpu.memory_space<smem>>
    %12 = vector.broadcast %11 : f32 to vector<1x128xf32>
    %13 = arith.mulf %3, %12 : vector<1x128xf32>
    %14 = arith.addf %10, %13 : vector<1x128xf32>
    %c15 = arith.constant 15 : index
    %15 = memref.load %arg1[%c15] : memref<26xf32, #tpu.memory_space<smem>>
    %16 = vector.broadcast %15 : f32 to vector<1x128xf32>
    %17 = arith.addf %14, %16 : vector<1x128xf32>
    %cst = arith.constant 0.000000e+00 : f32
    %18 = vector.broadcast %cst : f32 to vector<1x128xf32>
    %19 = arith.maximumf %17, %18 : vector<1x128xf32>
    %c1 = arith.constant 1 : index
    %20 = memref.load %arg1[%c1] : memref<26xf32, #tpu.memory_space<smem>>
    %21 = vector.broadcast %20 : f32 to vector<1x128xf32>
    %22 = arith.mulf %1, %21 : vector<1x128xf32>
    %c6 = arith.constant 6 : index
    %23 = memref.load %arg1[%c6] : memref<26xf32, #tpu.memory_space<smem>>
    %24 = vector.broadcast %23 : f32 to vector<1x128xf32>
    %25 = arith.mulf %2, %24 : vector<1x128xf32>
    %26 = arith.addf %22, %25 : vector<1x128xf32>
    %c11 = arith.constant 11 : index
    %27 = memref.load %arg1[%c11] : memref<26xf32, #tpu.memory_space<smem>>
    %28 = vector.broadcast %27 : f32 to vector<1x128xf32>
    %29 = arith.mulf %3, %28 : vector<1x128xf32>
    %30 = arith.addf %26, %29 : vector<1x128xf32>
    %c16 = arith.constant 16 : index
    %31 = memref.load %arg1[%c16] : memref<26xf32, #tpu.memory_space<smem>>
    %32 = vector.broadcast %31 : f32 to vector<1x128xf32>
    %33 = arith.addf %30, %32 : vector<1x128xf32>
    %cst_2 = arith.constant 0.000000e+00 : f32
    %34 = vector.broadcast %cst_2 : f32 to vector<1x128xf32>
    %35 = arith.maximumf %33, %34 : vector<1x128xf32>
    %c2 = arith.constant 2 : index
    %36 = memref.load %arg1[%c2] : memref<26xf32, #tpu.memory_space<smem>>
    %37 = vector.broadcast %36 : f32 to vector<1x128xf32>
    %38 = arith.mulf %1, %37 : vector<1x128xf32>
    %c7 = arith.constant 7 : index
    %39 = memref.load %arg1[%c7] : memref<26xf32, #tpu.memory_space<smem>>
    %40 = vector.broadcast %39 : f32 to vector<1x128xf32>
    %41 = arith.mulf %2, %40 : vector<1x128xf32>
    %42 = arith.addf %38, %41 : vector<1x128xf32>
    %c12 = arith.constant 12 : index
    %43 = memref.load %arg1[%c12] : memref<26xf32, #tpu.memory_space<smem>>
    %44 = vector.broadcast %43 : f32 to vector<1x128xf32>
    %45 = arith.mulf %3, %44 : vector<1x128xf32>
    %46 = arith.addf %42, %45 : vector<1x128xf32>
    %c17 = arith.constant 17 : index
    %47 = memref.load %arg1[%c17] : memref<26xf32, #tpu.memory_space<smem>>
    %48 = vector.broadcast %47 : f32 to vector<1x128xf32>
    %49 = arith.addf %46, %48 : vector<1x128xf32>
    %cst_3 = arith.constant 0.000000e+00 : f32
    %50 = vector.broadcast %cst_3 : f32 to vector<1x128xf32>
    %51 = arith.maximumf %49, %50 : vector<1x128xf32>
    %c3 = arith.constant 3 : index
    %52 = memref.load %arg1[%c3] : memref<26xf32, #tpu.memory_space<smem>>
    %53 = vector.broadcast %52 : f32 to vector<1x128xf32>
    %54 = arith.mulf %1, %53 : vector<1x128xf32>
    %c8 = arith.constant 8 : index
    %55 = memref.load %arg1[%c8] : memref<26xf32, #tpu.memory_space<smem>>
    %56 = vector.broadcast %55 : f32 to vector<1x128xf32>
    %57 = arith.mulf %2, %56 : vector<1x128xf32>
    %58 = arith.addf %54, %57 : vector<1x128xf32>
    %c13 = arith.constant 13 : index
    %59 = memref.load %arg1[%c13] : memref<26xf32, #tpu.memory_space<smem>>
    %60 = vector.broadcast %59 : f32 to vector<1x128xf32>
    %61 = arith.mulf %3, %60 : vector<1x128xf32>
    %62 = arith.addf %58, %61 : vector<1x128xf32>
    %c18 = arith.constant 18 : index
    %63 = memref.load %arg1[%c18] : memref<26xf32, #tpu.memory_space<smem>>
    %64 = vector.broadcast %63 : f32 to vector<1x128xf32>
    %65 = arith.addf %62, %64 : vector<1x128xf32>
    %cst_4 = arith.constant 0.000000e+00 : f32
    %66 = vector.broadcast %cst_4 : f32 to vector<1x128xf32>
    %67 = arith.maximumf %65, %66 : vector<1x128xf32>
    %c4 = arith.constant 4 : index
    %68 = memref.load %arg1[%c4] : memref<26xf32, #tpu.memory_space<smem>>
    %69 = vector.broadcast %68 : f32 to vector<1x128xf32>
    %70 = arith.mulf %1, %69 : vector<1x128xf32>
    %c9 = arith.constant 9 : index
    %71 = memref.load %arg1[%c9] : memref<26xf32, #tpu.memory_space<smem>>
    %72 = vector.broadcast %71 : f32 to vector<1x128xf32>
    %73 = arith.mulf %2, %72 : vector<1x128xf32>
    %74 = arith.addf %70, %73 : vector<1x128xf32>
    %c14 = arith.constant 14 : index
    %75 = memref.load %arg1[%c14] : memref<26xf32, #tpu.memory_space<smem>>
    %76 = vector.broadcast %75 : f32 to vector<1x128xf32>
    %77 = arith.mulf %3, %76 : vector<1x128xf32>
    %78 = arith.addf %74, %77 : vector<1x128xf32>
    %c19 = arith.constant 19 : index
    %79 = memref.load %arg1[%c19] : memref<26xf32, #tpu.memory_space<smem>>
    %80 = vector.broadcast %79 : f32 to vector<1x128xf32>
    %81 = arith.addf %78, %80 : vector<1x128xf32>
    %cst_5 = arith.constant 0.000000e+00 : f32
    %82 = vector.broadcast %cst_5 : f32 to vector<1x128xf32>
    %83 = arith.maximumf %81, %82 : vector<1x128xf32>
    %c20 = arith.constant 20 : index
    %84 = memref.load %arg1[%c20] : memref<26xf32, #tpu.memory_space<smem>>
    %85 = vector.broadcast %84 : f32 to vector<1x128xf32>
    %86 = arith.mulf %19, %85 : vector<1x128xf32>
    %c21 = arith.constant 21 : index
    %87 = memref.load %arg1[%c21] : memref<26xf32, #tpu.memory_space<smem>>
    %88 = vector.broadcast %87 : f32 to vector<1x128xf32>
    %89 = arith.mulf %35, %88 : vector<1x128xf32>
    %90 = arith.addf %86, %89 : vector<1x128xf32>
    %c22 = arith.constant 22 : index
    %91 = memref.load %arg1[%c22] : memref<26xf32, #tpu.memory_space<smem>>
    %92 = vector.broadcast %91 : f32 to vector<1x128xf32>
    %93 = arith.mulf %51, %92 : vector<1x128xf32>
    %94 = arith.addf %90, %93 : vector<1x128xf32>
    %c23 = arith.constant 23 : index
    %95 = memref.load %arg1[%c23] : memref<26xf32, #tpu.memory_space<smem>>
    %96 = vector.broadcast %95 : f32 to vector<1x128xf32>
    %97 = arith.mulf %67, %96 : vector<1x128xf32>
    %98 = arith.addf %94, %97 : vector<1x128xf32>
    %c24 = arith.constant 24 : index
    %99 = memref.load %arg1[%c24] : memref<26xf32, #tpu.memory_space<smem>>
    %100 = vector.broadcast %99 : f32 to vector<1x128xf32>
    %101 = arith.mulf %83, %100 : vector<1x128xf32>
    %102 = arith.addf %98, %101 : vector<1x128xf32>
    %c25 = arith.constant 25 : index
    %103 = memref.load %arg1[%c25] : memref<26xf32, #tpu.memory_space<smem>>
    %104 = vector.broadcast %103 : f32 to vector<1x128xf32>
    %105 = arith.addf %102, %104 : vector<1x128xf32>
    %106 = math.exp %105 : vector<1x128xf32>
    %cst_6 = arith.constant 1.000000e+00 : f32
    %107 = vector.broadcast %cst_6 : f32 to vector<1x128xf32>
    %108 = arith.addf %107, %106 : vector<1x128xf32>
    %109 = tpu.reciprocal %108 {approx = true} : vector<1x128xf32> -> vector<1x128xf32>
    %c0_7 = arith.constant 0 : index
    %c0_8 = arith.constant 0 : index
    %110 = vector.load %arg3[%c0_7, %c0_8] : memref<2x128xf32, #tpu.memory_space<vmem>>, vector<1x128xf32>
    tpu.vector_store %arg3[%c0_7, %c0_8], %109 {strides = array<i32>} : memref<2x128xf32, #tpu.memory_space<vmem>>, vector<1x128xf32>,
    %cst_9 = arith.constant 1.000000e+00 : f32
    %111 = vector.broadcast %cst_9 : f32 to vector<1x128xf32>
    %112 = arith.subf %111, %109 : vector<1x128xf32>
    %c1_10 = arith.constant 1 : index
    %c0_11 = arith.constant 0 : index
    %113 = vector.load %arg3[%c1_10, %c0_11] : memref<2x128xf32, #tpu.memory_space<vmem>>, vector<1x128xf32>
    tpu.vector_store %arg3[%c1_10, %c0_11], %112 {strides = array<i32>} : memref<2x128xf32, #tpu.memory_space<vmem>>, vector<1x128xf32>,
    return
  }
  func.func @transform_0(%arg0: i32) -> i32 {
    %c0_i32 = arith.constant 0 : i32
    %c0_i32_0 = arith.constant 0 : i32
    return %c0_i32 : i32
  }
  func.func @transform_1(%arg0: i32) -> (i32, i32) {
    %c0_i32 = arith.constant 0 : i32
    %c0_i32_0 = arith.constant 0 : i32
    return %c0_i32, %arg0 : i32, i32
  }
  func.func @transform_2(%arg0: i32) -> (i32, i32) {
    %c0_i32 = arith.constant 0 : i32
    %c0_i32_0 = arith.constant 0 : i32
    return %c0_i32, %arg0 : i32, i32
  }
}

</mosaic_0001>

<bundles_post_ra>
// kernel: tpu_custom_call.1
= control target key start
LH: loop header
LB: loop body
LE: loop exit
PB: predicated region body
PF: predicated region fallthrough
CT: control target
= control target key end

     0   :  { %7 = vsyncpa [#allocation5], 0  ;;  %s403_s0 = inlined_call_operand.hbm [shape: f32[26], index: 0, kind: input, shape index: {}]   ;;  %s404_s1 = inlined_call_operand.hbm [shape: f32[3,128], index: 1, kind: input, shape index: {}]   ;;  %s405_s2 = inlined_call_operand.hbm [shape: f32[2,128], index: 2, kind: output, shape index: {}]  }
   0x1   :  { %8 = vsyncpa [#allocation3], 0 }
   0x2   :  { %9 = vsyncpa [#allocation4], 0  ;;  %s218_s11 = scalar_lea.hbm %s403_s0, 16 }
   0x3   :  { %p219_p0 = scmp.ne.s32.totalorder %s403_s0, %s218_s11  ;;  %p222_p1 = scmp.lt.u32.totalorder %s218_s11, %s403_s0 }
   0x5   :  { %p224_p2 = pnand %p222_p1, %p219_p0 }
   0x7   :  { %227 = shalt.err (!%p224_p2)
}
   0x8   :  { %s278_s16 = smov [#allocation2]   ;;  %s279_s19 = smov [#allocation6]  }
   0x9   :  { %17 = dma.hbm_to_smem %s403_s0, 16, %s278_s16, [#allocation5]  }
   0xa   :  { %s24_s20 = sshll.u32 %s279_s19, 4  ;;  %s228_s23 = scalar_lea.hbm %s404_s1, 64  ;;  %s25_s20 = int_to_ptr.vmem [resolvable:$true] %s24_s20 }
   0xb   :  { %p229_p3 = scmp.ne.s32.totalorder %s404_s1, %s228_s23  ;;  %p232_p4 = scmp.lt.u32.totalorder %s228_s23, %s404_s1 }
   0xd   :  { %p234_p5 = pnand %p232_p4, %p229_p3 }
   0xf   :  { %237 = shalt.err (!%p234_p5)
}
  0x10   :  { %s238_s28 = scalar_lea.vmem %s25_s20, 64  ;;  %p243_p7 = scmp.lt.s32.totalorder %s25_s20, %s25_s20 }
  0x11   :  { %p239_p6 = scmp.ne.s32.totalorder %s25_s20, %s238_s28  ;;  %p244_p8 = scmp.lt.s32.totalorder %s238_s28, %s238_s28 }
  0x13   :  { %p245_p9 = por %p244_p8, %p243_p7 }
  0x15   :  { %p246_p10 = pnand %p245_p9, %p239_p6 }
  0x17   :  { %249 = shalt.err (!%p246_p10)
}
  0x18   :  { %27 = dma.hbm_to_vmem [thread:$0]  %s404_s1, 64, %s25_s20, [#allocation3]  }
  0x19   :  { %272 = dma.done.wait [#allocation5], 16  }
  0x1a   :  { %273 = vsyncadd [#allocation5], 4294967280 }
  0x1b   :  { %274 = dma.done.wait [#allocation3], 64  }
  0x1c   :  { %275 = vsyncadd [#allocation3], 4294967232 }
  0x1d   :  { %34 = sfence }
  0x1e   :  { %s36_s30 = sld [smem:[#allocation2]]  ;;  %s186_s3 = sld [smem:[#allocation2 + $0x5]]  ;;  %v324_v0 = vld [vmem:[#allocation6] sm:$0x7] }
  0x1f   :  { %s187_s4 = sld [smem:[#allocation2 + $0xa]]  ;;  %s320_s5 = sld [smem:[#allocation2 + $0xf]] }
  0x20   :  { %s189_s6 = sld [smem:[#allocation2 + $0x1]]  ;;  %s190_s7 = sld [smem:[#allocation2 + $0x6]] }
  0x21   :  { %s191_s8 = sld [smem:[#allocation2 + $0xb]]  ;;  %s322_s9 = sld [smem:[#allocation2 + $0x10]] }
  0x22   :  { %s326_s10 = sld [smem:[#allocation2 + $0x2]]  ;;  %s328_s1 = sld [smem:[#allocation2 + $0x7]] }
  0x23   :  { %s330_s11 = sld [smem:[#allocation2 + $0xc]]  ;;  %s332_s12 = sld [smem:[#allocation2 + $0x3]] }
  0x24   :  { %v37_v1 = vstv %s36_s30  ;;  %v40_v2 = vstv %s186_s3  ;;  %s334_s13 = sld [smem:[#allocation2 + $0x8]]  ;;  %s338_s14 = sld [smem:[#allocation2 + $0xd]] }
  0x25   :  { %v38_v3 = vmul.f32 %v37_v1, %v324_v0  ;;  %v41_v4 = vmul.f32 %v40_v2, %v324_v0  ;;  %v47_v5 = vstv %s187_s4  ;;  %s341_s15 = sld [smem:[#allocation2 + $0x11]]  ;;  %s343_s16 = sld [smem:[#allocation2 + $0x4]]  ;;  %v54_v14 = vstv %s320_s5 }
  0x26   :  { %v48_v6 = vmul.f32 %v47_v5, %v324_v0  ;;  %v58_v7 = vstv %s189_s6  ;;  %v61_v8 = vstv %s190_s7  ;;  %s350_s17 = sld [smem:[#allocation2 + $0x9]]  ;;  %s352_s18 = sld [smem:[#allocation2 + $0xe]] }
  0x27   :  { %v43_v9 = vrot.slane %v41_v4, 1  ;;  %v59_v10 = vmul.f32 %v58_v7, %v324_v0  ;;  %v62_v11 = vmul.f32 %v61_v8, %v324_v0  ;;  %v68_v12 = vstv %s191_s8  ;;  %s356_s19 = sld [smem:[#allocation2 + $0x12]]  ;;  %s361_s20 = sld [smem:[#allocation2 + $0x14]] }
  0x28   :  { %v50_v13 = vrot.slane %v48_v6, 2  ;;  %v69_v15 = vmul.f32 %v68_v12, %v324_v0  ;;  %v79_v16 = vstv %s326_s10  ;;  %v75_v19 = vstv %s322_s9  ;;  %s363_s21 = sld [smem:[#allocation2 + $0x15]]  ;;  %s370_s22 = sld [smem:[#allocation2 + $0x16]] }
  0x29   :  { %v45_v17 = vadd.f32 %v43_v9, %v38_v3  ;;  %v64_v18 = vrot.slane %v62_v11, 1  ;;  %v82_v20 = vstv %s328_s1  ;;  %v80_v22 = vmul.f32 %v79_v16, %v324_v0  ;;  %s376_s23 = sld [smem:[#allocation2 + $0x13]]  ;;  %s378_s24 = sld [smem:[#allocation2 + $0x17]] }
  0x2a   :  { %v71_v21 = vrot.slane %v69_v15, 2  ;;  %v83_v23 = vmul.f32 %v82_v20, %v324_v0  ;;  %v89_v24 = vstv %s330_s11  ;;  %v100_v28 = vstv %s332_s12  ;;  %s209_s25 = sld [smem:[#allocation2 + $0x18]]  ;;  %s210_s26 = sld [smem:[#allocation2 + $0x19]] }
  0x2b   :  { %v52_v25 = vadd.f32 %v50_v13, %v45_v17  ;;  %v66_v26 = vadd.f32 %v64_v18, %v59_v10  ;;  %v90_v27 = vmul.f32 %v89_v24, %v324_v0  ;;  %v101_v30 = vmul.f32 %v100_v28, %v324_v0  ;;  %s280_s27 = smov [#allocation7]  }
  0x2c   :  { %v85_v29 = vrot.slane %v83_v23, 1  ;;  %v103_v31 = vstv %s334_s13  ;;  %v110_v32 = vstv %s338_s14  ;;  %v96_v38 = vstv %s341_s15  ;;  %s176_s28 = sshll.u32 %s280_s27, 4  ;;  %s177_s28 = int_to_ptr.vmem [resolvable:$true] %s176_s28 }
  0x2d   :  { %v55_v33 = vadd.f32 %v54_v14, %v52_v25  ;;  %v73_v34 = vadd.f32 %v71_v21, %v66_v26  ;;  %v92_v35 = vrot.slane %v90_v27, 2  ;;  %v104_v36 = vmul.f32 %v103_v31, %v324_v0  ;;  %s250_s0 = scalar_lea.vmem %s177_s28, 32  ;;  %p255_p12 = scmp.lt.s32.totalorder %s177_s28, %s177_s28 }
  0x2e   :  { %v87_v37 = vadd.f32 %v85_v29, %v80_v22  ;;  %v111_v39 = vmul.f32 %v110_v32, %v324_v0  ;;  %v121_v40 = vstv %s343_s16  ;;  %v124_v47 = vstv %s350_s17  ;;  %p251_p11 = scmp.ne.s32.totalorder %s177_s28, %s250_s0  ;;  %p256_p13 = scmp.lt.s32.totalorder %s250_s0, %s250_s0 }
  0x2f   :  { %v56_v41 = vmax.f32 %v55_v33, 0.0  ;;  %v76_v42 = vadd.f32 %v75_v19, %v73_v34  ;;  %v106_v43 = vrot.slane %v104_v36, 1  ;;  %v122_v44 = vmul.f32 %v121_v40, %v324_v0 }
  0x30   :  { %v94_v45 = vadd.f32 %v92_v35, %v87_v37  ;;  %v113_v46 = vrot.slane %v111_v39, 2  ;;  %v131_v48 = vstv %s352_s18  ;;  %v125_v51 = vmul.f32 %v124_v47, %v324_v0  ;;  %p257_p0 = por %p256_p13, %p255_p12 }
  0x31   :  { %v77_v49 = vmax.f32 %v76_v42, 0.0  ;;  %v108_v50 = vadd.f32 %v106_v43, %v101_v30  ;;  %v132_v52 = vmul.f32 %v131_v48, %v324_v0  ;;  %v117_v54 = vstv %s356_s19 }
  0x32   :  { %v97_v53 = vadd.f32 %v96_v38, %v94_v45  ;;  %v142_v55 = vstv %s361_s20  ;;  %v145_v56 = vstv %s363_s21  ;;  %v127_v58 = vrot.slane %v125_v51, 1  ;;  %p258_p1 = pnand %p257_p0, %p251_p11 }
  0x33   :  { %v115_v57 = vadd.f32 %v113_v46, %v108_v50  ;;  %v134_v59 = vrot.slane %v132_v52, 2  ;;  %v143_v60 = vmul.f32 %v142_v55, %v56_v41  ;;  %v146_v62 = vmul.f32 %v145_v56, %v77_v49 }
  0x34   :  { %v98_v61 = vmax.f32 %v97_v53, 0.0  ;;  %v149_v63 = vstv %s370_s22  ;;  %v129_v2 = vadd.f32 %v127_v58, %v122_v44  ;;  %v138_v3 = vstv %s376_s23 }
  0x35   :  { %v118_v1 = vadd.f32 %v117_v54, %v115_v57  ;;  %v147_v4 = vadd.f32 %v146_v62, %v143_v60  ;;  %v153_v6 = vstv %s378_s24  ;;  %v157_v11 = vstv %s209_s25 }
  0x36   :  { %v150_v5 = vmul.f32 %v149_v63, %v98_v61  ;;  %v136_v7 = vadd.f32 %v134_v59, %v129_v2  ;;  %v161_v15 = vstv %s210_s26 }
  0x37   :  { %v119_v0 = vmax.f32 %v118_v1, 0.0 }
  0x38   :  { %v151_v8 = vadd.f32 %v150_v5, %v147_v4  ;;  %v139_v9 = vadd.f32 %v138_v3, %v136_v7 }
  0x39   :  { %v154_v10 = vmul.f32 %v153_v6, %v119_v0 }
  0x3a   :  { %v140_v12 = vmax.f32 %v139_v9, 0.0 }
  0x3b   :  { %v155_v13 = vadd.f32 %v154_v10, %v151_v8 }
  0x3c   :  { %v158_v14 = vmul.f32 %v157_v11, %v140_v12 }
  0x3e   :  { %v159_v16 = vadd.f32 %v158_v14, %v155_v13 }
  0x40   :  { %v162_v17 = vadd.f32 %v161_v15, %v159_v16 }
  0x42   :  { %v163_v18 = vmul.f32 1.442695, %v162_v17 }
  0x44   :  { %214 = vpow2.f32 %v163_v18 }
  0x4e   :  { %v215_v19 = vpop.eup %214 }
  0x4f   :  { %v165_v20 = vadd.f32 1.0, %v215_v19 }
  0x51   :  { %216 = vrcp.f32 %v165_v20 }
  0x5b   :  { %v217_v21 = vpop.eup %216 }
  0x5c   :  { %167 = vst [vmem:[#allocation7] sm:$0x1] %v217_v21  ;;  %v168_v22 = vsub.f32 1.0, %v217_v21 }
  0x5e   :  { %169 = vst [vmem:[#allocation7 + $0x1] sm:$0x1] %v168_v22 }
  0x5f   :  { %261 = shalt.err (!%p258_p1)
}
  0x60   :  { %s262_s3 = scalar_lea.hbm %s405_s2, 32 }
  0x61   :  { %p263_p2 = scmp.ne.s32.totalorder %s405_s2, %s262_s3  ;;  %p266_p3 = scmp.lt.u32.totalorder %s262_s3, %s405_s2 }
  0x63   :  { %p268_p4 = pnand %p266_p3, %p263_p2 }
  0x65   :  { %271 = shalt.err (!%p268_p4)
}
  0x66   :  { %179 = dma.vmem_to_hbm [thread:$0]  %s177_s28, 32, %s405_s2, [#allocation4]  }
  0x67   :  { %276 = dma.done.wait [#allocation4], 32  }
  0x68   :  { %277 = vsyncadd [#allocation4], 4294967264 }
  0x69   :  { %183 = vsyncpa [#allocation3], 1 }
  0x6a   :  { %184 = vsyncpa [#allocation4], 1 }
  0x6b   :  { %185 = vsyncpa [#allocation5], 1 }

</bundles_post_ra>
